<compile_context>
chip_gen: v7x
topology: tpu7x:2x2x1
jax: 0.10.0
libtpu: 0.0.40
codegen_flags: <defaults>
</compile_context>

<pallas_src>
import functools
import math

import jax
import jax.numpy as jnp
from jax.experimental import pallas as pl
from jax.experimental.pallas import tpu as pltpu

_SUBLANE = 8      # f32 sublane tile
_LANE = 128       # lane tile
_NEG_BIG = -1e30  # value baked into padded logit columns (finite -> no inf-inf)


def _round_up(n, m):
    return ((n + m - 1) // m) * m


def _pad2(a, rows, cols):
    a = jnp.asarray(a, jnp.float32)
    return jnp.pad(a, ((0, rows - a.shape[0]), (0, cols - a.shape[1])))


def rnn_seq_kernel(x_ref, h0_ref, wxh_ref, whh_ref, bh_ref, wxo_ref, who_ref,
                   bo_ref, out_ref, hid_ref, h_slab, *, T, Bp):
    """Fused T-step RNN classifier.

    x_ref   : (T*Bp, Ip) f32    time-major flattened, batch padded to sublanes
    h0_ref  : (Bp, Hp)   f32
    w*_ref  : bf16 [in, out] weight tiles (x-part / h-part split, zero padded)
    bh_ref  : (Bp, Hp)   f32    pre-broadcast hidden bias
    bo_ref  : (1, Op)    f32    output bias, padded columns = -1e30
    out_ref : (T*Bp, Op) f32    per-step log-probs
    hid_ref : (Bp, Hp)   f32    final hidden state
    h_slab  : (T*Bp, Hp) f32    scratch: hidden used at each step
    """
    # Resident operands loaded once (hoisted out of the unrolled loop).
    wxh = wxh_ref[...]
    whh = whh_ref[...]
    bh = bh_ref[...]

    # ---- serial recurrence: only h_{t-1} -> h_t is sequential ---------------
    h = h0_ref[...]                                        # f32 (Bp, Hp)
    for t in range(T):                                     # static unroll
        h_slab[pl.ds(t * Bp, Bp), :] = h                   # hidden used at t
        x_t = x_ref[pl.ds(t * Bp, Bp), :].astype(jnp.bfloat16)
        h = (jnp.dot(x_t, wxh, preferred_element_type=jnp.float32)
             + jnp.dot(h.astype(jnp.bfloat16), whh,
                       preferred_element_type=jnp.float32)
             + bh)
    hid_ref[...] = h.astype(hid_ref.dtype)

    # ---- hoisted output projection + log-softmax over all T*Bp rows ---------
    x_all = x_ref[...].astype(jnp.bfloat16)                # (T*Bp, Ip)
    h_all = h_slab[...].astype(jnp.bfloat16)               # (T*Bp, Hp)
    logits = (jnp.dot(x_all, wxo_ref[...], preferred_element_type=jnp.float32)
              + jnp.dot(h_all, who_ref[...], preferred_element_type=jnp.float32)
              + bo_ref[...])          # padded cols == -1e30 (baked into b_o)
    m = jnp.max(logits, axis=1, keepdims=True)
    shifted = logits - m
    lse = jnp.log(jnp.sum(jnp.exp(shifted), axis=1, keepdims=True))
    out_ref[...] = (shifted - lse).astype(out_ref.dtype)


def prepare_params(w_i2h, b_i2h, w_i2o, b_i2o, input_size, batch_size):
    """One-time prep: split PyTorch [out, in] weights into x/h parts with
    [in, out] layout, zero-pad feature dims to 128 lanes, cast weights to
    bf16, pre-broadcast b_h, and bake the padded-column mask into b_o."""
    I = int(input_size)
    H = int(w_i2h.shape[0])
    O = int(w_i2o.shape[0])
    Ip, Hp, Op = _round_up(I, _LANE), _round_up(H, _LANE), _round_up(O, _LANE)
    Bp = _round_up(int(batch_size), _SUBLANE)

    w_i2h = jnp.asarray(w_i2h, jnp.float32)
    w_i2o = jnp.asarray(w_i2o, jnp.float32)
    wxh = _pad2(w_i2h[:, :I].T, Ip, Hp).astype(jnp.bfloat16)
    whh = _pad2(w_i2h[:, I:].T, Hp, Hp).astype(jnp.bfloat16)
    wxo = _pad2(w_i2o[:, :I].T, Ip, Op).astype(jnp.bfloat16)
    who = _pad2(w_i2o[:, I:].T, Hp, Op).astype(jnp.bfloat16)

    # b_h pre-broadcast to a full (Bp, Hp) tile: per-step add is unmasked.
    bh = jnp.broadcast_to(
        _pad2(jnp.asarray(b_i2h, jnp.float32).reshape(1, H), 1, Hp), (Bp, Hp))
    # b_o with -1e30 in padded columns.  Padded weight columns are zero, so
    # padded logits equal b_o and vanish inside the log-softmax.
    bo = jnp.pad(jnp.asarray(b_i2o, jnp.float32).reshape(1, O),
                 ((0, 0), (0, Op - O)), constant_values=_NEG_BIG)

    arrays = (wxh, whh, bh, wxo, who, bo)
    dims = dict(I=I, H=H, O=O, Ip=Ip, Hp=Hp, Op=Op, Bp=Bp)
    return arrays, dims


def rnn_classifier_sequence(x_seq, h0, params):
    """Run T timesteps in one pallas_call.

    x_seq: [T, B, I], h0: [B, H] -> (log_probs [T, B, O], final hidden [B, H]).
    """
    arrays, d = params
    wxh, whh, bh, wxo, who, bo = arrays
    T, B, I = x_seq.shape
    Ip, Hp, Op, Bp = d["Ip"], d["Hp"], d["Op"], d["Bp"]
    assert I == d["I"] and B <= Bp

    xp = jnp.pad(jnp.asarray(x_seq, jnp.float32),
                 ((0, 0), (0, Bp - B), (0, Ip - I))).reshape(T * Bp, Ip)
    hp = _pad2(h0, Bp, Hp)

    vmem = pl.BlockSpec(memory_space=pltpu.MemorySpace.VMEM)
    cost = pl.CostEstimate(
        flops=2 * T * Bp * (Ip * Hp + Hp * Hp + Ip * Op + Hp * Op),
        transcendentals=T * Bp * (Op + 1),
        bytes_accessed=(4 * (T * Bp * (Ip + Op) + 3 * Bp * Hp + Op)
                        + 2 * (Ip + Hp) * (Hp + Op)),
    )
    out2d, hid = pl.pallas_call(
        functools.partial(rnn_seq_kernel, T=T, Bp=Bp),
        out_shape=(jax.ShapeDtypeStruct((T * Bp, Op), jnp.float32),
                   jax.ShapeDtypeStruct((Bp, Hp), jnp.float32)),
        in_specs=[vmem] * 8,
        out_specs=(vmem, vmem),
        scratch_shapes=[pltpu.VMEM((T * Bp, Hp), jnp.float32)],
        cost_estimate=cost,
    )(xp, hp, wxh, whh, bh, wxo, who, bo)

    out = out2d.reshape(T, Bp, Op)[:, :B, :d["O"]]
    return out, hid[:B, :d["H"]]


def rnn_classifier_forward(x, h, params):
    """Single step (== RNNclassifier.forward). x: [B, I], h: [B, H]."""
    out_seq, hid = rnn_classifier_sequence(x[None], h, params)
    return out_seq[0], hid


if __name__ == "__main__":
    # Small shapes consistent with the module: batch=2, input_size=16,
    # hidden_size=32, output_size=8, sequence length=8.
    B, I, H, O, T = 2, 16, 32, 8, 8

    key = jax.random.PRNGKey(0)
    k1, k2, k3, k4, k5 = jax.random.split(key, 5)

    # Deterministic synthetic parameters (PyTorch nn.Linear layout: [out, in]).
    bound = 1.0 / math.sqrt(I + H)
    w_i2h = jax.random.uniform(k1, (H, I + H), jnp.float32, -bound, bound)
    b_i2h = jax.random.uniform(k2, (H,), jnp.float32, -bound, bound)
    w_i2o = jax.random.uniform(k3, (O, I + H), jnp.float32, -bound, bound)
    b_i2o = jax.random.uniform(k4, (O,), jnp.float32, -bound, bound)

    x_seq = jax.random.normal(k5, (T, B, I), jnp.float32)
    h0 = jnp.zeros((B, H), jnp.float32)  # initHidden() broadcast over batch

    # Prepare padded / bf16 parameters ONCE (hoisted out of the call path).
    params = prepare_params(w_i2h, b_i2h, w_i2o, b_i2o, I, B)

    # bf16 MXU operands (f32 accumulation) vs. the f32 reference -> loosened
    # tolerance; structural bugs would produce O(1) errors, rounding ~1e-2.
    TOL = 5e-2

    # --- single-step (== module.forward) ---
    out1, hid1 = rnn_classifier_forward(x_seq[0], h0, params)
    jax.block_until_ready((out1, hid1))

    combined = jnp.concatenate([x_seq[0], h0], axis=1)
    hid_ref = combined @ w_i2h.T + b_i2h
    out_ref = jax.nn.log_softmax(combined @ w_i2o.T + b_i2o, axis=1)
    assert jnp.allclose(out1, out_ref, atol=TOL), "single-step output mismatch"
    assert jnp.allclose(hid1, hid_ref, atol=TOL), "single-step hidden mismatch"

    # --- fused T-step recurrence (one launch) ---
    out_seq, hid_T = rnn_classifier_sequence(x_seq, h0, params)
    jax.block_until_ready((out_seq, hid_T))

    h = h0
    outs = []
    for t in range(T):
        c = jnp.concatenate([x_seq[t], h], axis=1)
        outs.append(jax.nn.log_softmax(c @ w_i2o.T + b_i2o, axis=1))
        h = c @ w_i2h.T + b_i2h
    outs = jnp.stack(outs)
    assert jnp.allclose(out_seq, outs, atol=TOL), "sequence output mismatch"
    assert jnp.allclose(hid_T, h, atol=TOL), "sequence hidden mismatch"

    print("KERNEL_OK")
</pallas_src>

<mosaic_0001>
module attributes {stable_mosaic.version = 11 : i64} {
  func.func @rnn_seq_kernel(%arg0: memref<8x128xf32, #tpu.memory_space<vmem>>, %arg1: memref<8x128xf32, #tpu.memory_space<vmem>>, %arg2: memref<128x128xbf16, #tpu.memory_space<vmem>>, %arg3: memref<128x128xbf16, #tpu.memory_space<vmem>>, %arg4: memref<8x128xf32, #tpu.memory_space<vmem>>, %arg5: memref<128x128xbf16, #tpu.memory_space<vmem>>, %arg6: memref<128x128xbf16, #tpu.memory_space<vmem>>, %arg7: memref<1x128xf32, #tpu.memory_space<vmem>>, %arg8: memref<8x128xf32, #tpu.memory_space<vmem>>, %arg9: memref<8x128xf32, #tpu.memory_space<vmem>>, %arg10: memref<8x128xf32, #tpu.memory_space<vmem>>) attributes {dimension_semantics = [], scalar_prefetch = 0 : i64, scratch_operands = 1 : i64, tpu.core_type = #tpu.core_type<tc>} {
    %c0 = arith.constant 0 : index
    %c0_0 = arith.constant 0 : index
    %0 = vector.load %arg2[%c0, %c0_0] : memref<128x128xbf16, #tpu.memory_space<vmem>>, vector<128x128xbf16>
    %c0_1 = arith.constant 0 : index
    %c0_2 = arith.constant 0 : index
    %1 = vector.load %arg3[%c0_1, %c0_2] : memref<128x128xbf16, #tpu.memory_space<vmem>>, vector<128x128xbf16>
    %c0_3 = arith.constant 0 : index
    %c0_4 = arith.constant 0 : index
    %2 = vector.load %arg4[%c0_3, %c0_4] : memref<8x128xf32, #tpu.memory_space<vmem>>, vector<8x128xf32>
    %c0_5 = arith.constant 0 : index
    %c0_6 = arith.constant 0 : index
    %3 = vector.load %arg1[%c0_5, %c0_6] : memref<8x128xf32, #tpu.memory_space<vmem>>, vector<8x128xf32>
    %c0_7 = arith.constant 0 : index
    %c0_8 = arith.constant 0 : index
    %4 = vector.load %arg10[%c0_7, %c0_8] : memref<8x128xf32, #tpu.memory_space<vmem>>, vector<8x128xf32>
    tpu.vector_store %arg10[%c0_7, %c0_8], %3 {strides = array<i32>} : memref<8x128xf32, #tpu.memory_space<vmem>>, vector<8x128xf32>,
    %c0_9 = arith.constant 0 : index
    %c0_10 = arith.constant 0 : index
    %5 = vector.load %arg0[%c0_9, %c0_10] : memref<8x128xf32, #tpu.memory_space<vmem>>, vector<8x128xf32>
    %6 = arith.truncf %5 : vector<8x128xf32> to vector<8x128xbf16>
    %cst = arith.constant dense<0.000000e+00> : vector<8x128xf32>
    %7 = tpu.matmul %6, %0, %cst {dimension_numbers = #tpu.dot_dimension_numbers<[1], [0], [0], [1], [0, 0, 1, 1], [], []>} : vector<8x128xbf16>, vector<128x128xbf16>, vector<8x128xf32> -> vector<8x128xf32>
    %8 = arith.truncf %3 : vector<8x128xf32> to vector<8x128xbf16>
    %cst_11 = arith.constant dense<0.000000e+00> : vector<8x128xf32>
    %9 = tpu.matmul %8, %1, %cst_11 {dimension_numbers = #tpu.dot_dimension_numbers<[1], [0], [0], [1], [0, 0, 1, 1], [], []>} : vector<8x128xbf16>, vector<128x128xbf16>, vector<8x128xf32> -> vector<8x128xf32>
    %10 = arith.addf %7, %9 : vector<8x128xf32>
    %11 = arith.addf %10, %2 : vector<8x128xf32>
    %c0_12 = arith.constant 0 : index
    %c0_13 = arith.constant 0 : index
    %12 = vector.load %arg9[%c0_12, %c0_13] : memref<8x128xf32, #tpu.memory_space<vmem>>, vector<8x128xf32>
    tpu.vector_store %arg9[%c0_12, %c0_13], %11 {strides = array<i32>} : memref<8x128xf32, #tpu.memory_space<vmem>>, vector<8x128xf32>,
    %c0_14 = arith.constant 0 : index
    %c0_15 = arith.constant 0 : index
    %13 = vector.load %arg0[%c0_14, %c0_15] : memref<8x128xf32, #tpu.memory_space<vmem>>, vector<8x128xf32>
    %14 = arith.truncf %13 : vector<8x128xf32> to vector<8x128xbf16>
    %c0_16 = arith.constant 0 : index
    %c0_17 = arith.constant 0 : index
    %15 = vector.load %arg10[%c0_16, %c0_17] : memref<8x128xf32, #tpu.memory_space<vmem>>, vector<8x128xf32>
    %16 = arith.truncf %15 : vector<8x128xf32> to vector<8x128xbf16>
    %c0_18 = arith.constant 0 : index
    %c0_19 = arith.constant 0 : index
    %17 = vector.load %arg5[%c0_18, %c0_19] : memref<128x128xbf16, #tpu.memory_space<vmem>>, vector<128x128xbf16>
    %cst_20 = arith.constant dense<0.000000e+00> : vector<8x128xf32>
    %18 = tpu.matmul %14, %17, %cst_20 {dimension_numbers = #tpu.dot_dimension_numbers<[1], [0], [0], [1], [0, 0, 1, 1], [], []>} : vector<8x128xbf16>, vector<128x128xbf16>, vector<8x128xf32> -> vector<8x128xf32>
    %c0_21 = arith.constant 0 : index
    %c0_22 = arith.constant 0 : index
    %19 = vector.load %arg6[%c0_21, %c0_22] : memref<128x128xbf16, #tpu.memory_space<vmem>>, vector<128x128xbf16>
    %cst_23 = arith.constant dense<0.000000e+00> : vector<8x128xf32>
    %20 = tpu.matmul %16, %19, %cst_23 {dimension_numbers = #tpu.dot_dimension_numbers<[1], [0], [0], [1], [0, 0, 1, 1], [], []>} : vector<8x128xbf16>, vector<128x128xbf16>, vector<8x128xf32> -> vector<8x128xf32>
    %21 = arith.addf %18, %20 : vector<8x128xf32>
    %c0_24 = arith.constant 0 : index
    %c0_25 = arith.constant 0 : index
    %22 = vector.load %arg7[%c0_24, %c0_25] : memref<1x128xf32, #tpu.memory_space<vmem>>, vector<1x128xf32>
    %23 = vector.broadcast %22 : vector<1x128xf32> to vector<8x128xf32>
    %24 = arith.addf %21, %23 : vector<8x128xf32>
    %cst_26 = arith.constant dense<0xFF800000> : vector<8xf32>
    %25 = vector.multi_reduction <maximumf>, %24, %cst_26 [1] : vector<8x128xf32> to vector<8xf32>
    %26 = vector.shape_cast %25 : vector<8xf32> to vector<8x1xf32>
    %27 = vector.broadcast %26 : vector<8x1xf32> to vector<8x128xf32>
    %28 = arith.subf %24, %27 : vector<8x128xf32>
    %29 = math.exp %28 : vector<8x128xf32>
    %cst_27 = arith.constant dense<0.000000e+00> : vector<8xf32>
    %30 = vector.multi_reduction <add>, %29, %cst_27 [1] : vector<8x128xf32> to vector<8xf32>
    %31 = vector.shape_cast %30 : vector<8xf32> to vector<8x1xf32>
    %32 = math.log %31 : vector<8x1xf32>
    %33 = vector.broadcast %32 : vector<8x1xf32> to vector<8x128xf32>
    %34 = arith.subf %28, %33 : vector<8x128xf32>
    %c0_28 = arith.constant 0 : index
    %c0_29 = arith.constant 0 : index
    %35 = vector.load %arg8[%c0_28, %c0_29] : memref<8x128xf32, #tpu.memory_space<vmem>>, vector<8x128xf32>
    tpu.vector_store %arg8[%c0_28, %c0_29], %34 {strides = array<i32>} : memref<8x128xf32, #tpu.memory_space<vmem>>, vector<8x128xf32>,
    return
  }
}

</mosaic_0001>

<bundles_post_ra>
// kernel: tpu_custom_call.1
= control target key start
LH: loop header
LB: loop body
LE: loop exit
PB: predicated region body
PF: predicated region fallthrough
CT: control target
= control target key end

     0   :  { %15 = vsyncpa [#allocation4], 0  ;;  %s1192_s0 = inlined_call_operand.hbm [shape: f32[8,128], index: 0, kind: input, shape index: {}]   ;;  %s1193_s1 = inlined_call_operand.hbm [shape: f32[8,128], index: 1, kind: input, shape index: {}]   ;;  %s1194_s2 = inlined_call_operand.hbm [shape: bf16[128,128], index: 2, kind: input, shape index: {}]   ;;  %s1195_s3 = inlined_call_operand.hbm [shape: bf16[128,128], index: 3, kind: input, shape index: {}]   ;;  %s1196_s4 = inlined_call_operand.vmem [shape: f32[8,128], index: 4, kind: input, shape index: {}]   ;;  %s1197_s5 = inlined_call_operand.hbm [shape: bf16[128,128], index: 5, kind: input, shape index: {}]   ;;  %s1198_s6 = inlined_call_operand.hbm [shape: bf16[128,128], index: 6, kind: input, shape index: {}]   ;;  %s1199_s7 = inlined_call_operand.vmem [shape: f32[1,128], index: 7, kind: input, shape index: {}]   ;;  %s1200_s8 = inlined_call_operand.hbm [shape: f32[8,128], index: 8, kind: output, shape index: {0}]   ;;  %s1201_s9 = inlined_call_operand.hbm [shape: f32[8,128], index: 9, kind: output, shape index: {1}]  }
   0x1   :  { %16 = vsyncpa [#allocation7], 0 }
   0x2   :  { %17 = vsyncpa [#allocation10], 0 }
   0x3   :  { %18 = vsyncpa [#allocation13], 0 }
   0x4   :  { %19 = vsyncpa [#allocation5], 0 }
   0x5   :  { %20 = vsyncpa [#allocation16], 0  ;;  %s976_s30 = smov [#allocation6]   ;;  %s788_s13 = scalar_lea.hbm %s1193_s1, 128 }
   0x6   :  { %s37_s10 = sshll.u32 %s976_s30, 4  ;;  %p789_p0 = scmp.ne.s32.totalorder %s1193_s1, %s788_s13  ;;  %s38_s10 = int_to_ptr.vmem [resolvable:$true] %s37_s10 }
   0x7   :  { %p792_p1 = scmp.lt.u32.totalorder %s788_s13, %s1193_s1 }
   0x9   :  { %p794_p2 = pnand %p792_p1, %p789_p0 }
   0xb   :  { %797 = shalt.err (!%p794_p2)
}
   0xc   :  { %s798_s18 = scalar_lea.vmem %s38_s10, 128  ;;  %p803_p4 = scmp.lt.s32.totalorder %s38_s10, %s38_s10 }
   0xd   :  { %p799_p3 = scmp.ne.s32.totalorder %s38_s10, %s798_s18  ;;  %p804_p5 = scmp.lt.s32.totalorder %s798_s18, %s798_s18 }
   0xf   :  { %p805_p6 = por %p804_p5, %p803_p4 }
  0x11   :  { %p806_p7 = pnand %p805_p6, %p799_p3 }
  0x13   :  { %809 = shalt.err (!%p806_p7)
}
  0x14   :  { %40 = dma.hbm_to_vmem [thread:$0]  %s1193_s1, 128, %s38_s10, [#allocation7]  }
  0x15   :  { %s977_s21 = smov [#allocation9]   ;;  %s978_s23 = smov [#allocation3]  }
  0x16   :  { %s58_s22 = sshll.u32 %s977_s21, 4  ;;  %s27_s24 = sshll.u32 %s978_s23, 4  ;;  %s59_s22 = int_to_ptr.vmem [resolvable:$true] %s58_s22  ;;  %s28_s24 = int_to_ptr.vmem [resolvable:$true] %s27_s24 }
  0x17   :  { %s810_s27 = scalar_lea.hbm %s1195_s3, 1024 }
  0x18   :  { %p811_p8 = scmp.ne.s32.totalorder %s1195_s3, %s810_s27  ;;  %p814_p9 = scmp.lt.u32.totalorder %s810_s27, %s1195_s3 }
  0x1a   :  { %p816_p10 = pnand %p814_p9, %p811_p8 }
  0x1c   :  { %819 = shalt.err (!%p816_p10)
}
  0x1d   :  { %s820_s1 = scalar_lea.vmem %s59_s22, 1024  ;;  %p825_p12 = scmp.lt.s32.totalorder %s59_s22, %s59_s22 }
  0x1e   :  { %p821_p11 = scmp.ne.s32.totalorder %s59_s22, %s820_s1  ;;  %p826_p13 = scmp.lt.s32.totalorder %s820_s1, %s820_s1 }
  0x20   :  { %p827_p0 = por %p826_p13, %p825_p12 }
  0x22   :  { %p828_p1 = pnand %p827_p0, %p821_p11 }
  0x24   :  { %831 = shalt.err (!%p828_p1)
}
  0x25   :  { %s979_s10 = smov 64   ;;  %s980_s12 = smov 4  }
  0x26   :  { %64 = dma.hbm_to_vmem [thread:$0]  %s1195_s3, 1024, %s59_s22, [#allocation10], %s979_s10, %s979_s10, %s980_s12  }
  0x27   :  { %s832_s17 = scalar_lea.hbm %s1192_s0, 128 }
  0x28   :  { %p833_p2 = scmp.ne.s32.totalorder %s1192_s0, %s832_s17  ;;  %p836_p3 = scmp.lt.u32.totalorder %s832_s17, %s1192_s0 }
  0x2a   :  { %p838_p4 = pnand %p836_p3, %p833_p2 }
  0x2c   :  { %841 = shalt.err (!%p838_p4)
}
  0x2d   :  { %s842_s23 = scalar_lea.vmem %s28_s24, 128  ;;  %p847_p6 = scmp.lt.s32.totalorder %s28_s24, %s28_s24 }
  0x2e   :  { %p843_p5 = scmp.ne.s32.totalorder %s28_s24, %s842_s23  ;;  %p848_p7 = scmp.lt.s32.totalorder %s842_s23, %s842_s23 }
  0x30   :  { %p849_p8 = por %p848_p7, %p847_p6 }
  0x32   :  { %p850_p9 = pnand %p849_p8, %p843_p5 }
  0x34   :  { %853 = shalt.err (!%p850_p9)
}
  0x35   :  { %30 = dma.hbm_to_vmem [thread:$0]  %s1192_s0, 128, %s28_s24, [#allocation4]  }
  0x36   :  { %s981_s25 = smov [#allocation8]   ;;  %s982_s27 = smov [#allocation11]  }
  0x37   :  { %s46_s26 = sshll.u32 %s981_s25, 4  ;;  %s72_s28 = sshll.u32 %s982_s27, 4  ;;  %s47_s26 = int_to_ptr.vmem [resolvable:$true] %s46_s26  ;;  %s73_s28 = int_to_ptr.vmem [resolvable:$true] %s72_s28 }
  0x38   :  { %s854_s11 = scalar_lea.hbm %s1194_s2, 1024 }
  0x39   :  { %p855_p10 = scmp.ne.s32.totalorder %s1194_s2, %s854_s11  ;;  %p858_p11 = scmp.lt.u32.totalorder %s854_s11, %s1194_s2 }
  0x3b   :  { %p860_p12 = pnand %p858_p11, %p855_p10 }
  0x3d   :  { %863 = shalt.err (!%p860_p12)
}
  0x3e   :  { %s864_s0 = scalar_lea.vmem %s47_s26, 1024  ;;  %p869_p0 = scmp.lt.s32.totalorder %s47_s26, %s47_s26 }
  0x3f   :  { %p865_p13 = scmp.ne.s32.totalorder %s47_s26, %s864_s0  ;;  %p870_p1 = scmp.lt.s32.totalorder %s864_s0, %s864_s0 }
  0x41   :  { %p871_p2 = por %p870_p1, %p869_p0 }
  0x43   :  { %p872_p3 = pnand %p871_p2, %p865_p13 }
  0x45   :  { %875 = shalt.err (!%p872_p3)
}
  0x46   :  { %52 = dma.hbm_to_vmem [thread:$0]  %s1194_s2, 1024, %s47_s26, [#allocation7], %s979_s10, %s979_s10, %s980_s12  }
  0x47   :  { %s876_s19 = scalar_lea.hbm %s1197_s5, 1024 }
  0x48   :  { %p877_p4 = scmp.ne.s32.totalorder %s1197_s5, %s876_s19  ;;  %p880_p5 = scmp.lt.u32.totalorder %s876_s19, %s1197_s5 }
  0x4a   :  { %p882_p6 = pnand %p880_p5, %p877_p4 }
  0x4c   :  { %885 = shalt.err (!%p882_p6)
}
  0x4d   :  { %s886_s22 = scalar_lea.vmem %s73_s28, 1024  ;;  %p891_p8 = scmp.lt.s32.totalorder %s73_s28, %s73_s28 }
  0x4e   :  { %p887_p7 = scmp.ne.s32.totalorder %s73_s28, %s886_s22  ;;  %p892_p9 = scmp.lt.s32.totalorder %s886_s22, %s886_s22 }
  0x50   :  { %p893_p10 = por %p892_p9, %p891_p8 }
  0x52   :  { %p894_p11 = pnand %p893_p10, %p887_p7 }
  0x54   :  { %897 = shalt.err (!%p894_p11)
}
  0x55   :  { %78 = dma.hbm_to_vmem [thread:$0]  %s1197_s5, 1024, %s73_s28, [#allocation10], %s979_s10, %s979_s10, %s980_s12  }
  0x56   :  { %s983_s26 = smov [#allocation12]   ;;  %s898_s11 = scalar_lea.hbm %s1198_s6, 1024 }
  0x57   :  { %s84_s27 = sshll.u32 %s983_s26, 4  ;;  %p899_p12 = scmp.ne.s32.totalorder %s1198_s6, %s898_s11  ;;  %s85_s27 = int_to_ptr.vmem [resolvable:$true] %s84_s27 }
  0x58   :  { %p902_p13 = scmp.lt.u32.totalorder %s898_s11, %s1198_s6 }
  0x5a   :  { %p904_p0 = pnand %p902_p13, %p899_p12 }
  0x5c   :  { %907 = shalt.err (!%p904_p0)
}
  0x5d   :  { %s908_s0 = scalar_lea.vmem %s85_s27, 1024  ;;  %p913_p2 = scmp.lt.s32.totalorder %s85_s27, %s85_s27 }
  0x5e   :  { %p909_p1 = scmp.ne.s32.totalorder %s85_s27, %s908_s0  ;;  %p914_p3 = scmp.lt.s32.totalorder %s908_s0, %s908_s0 }
  0x60   :  { %p915_p4 = por %p914_p3, %p913_p2 }
  0x62   :  { %p916_p5 = pnand %p915_p4, %p909_p1 }
  0x64   :  { %919 = shalt.err (!%p916_p5)
}
  0x65   :  { %90 = dma.hbm_to_vmem [thread:$0]  %s1198_s6, 1024, %s85_s27, [#allocation13], %s979_s10, %s979_s10, %s980_s12  }
  0x66   :  { %964 = dma.done.wait [#allocation4], 128  }
  0x67   :  { %965 = vsyncadd [#allocation4], 4294967168 }
  0x68   :  { %966 = dma.done.wait [#allocation7], 1152  }
  0x69   :  { %967 = vsyncadd [#allocation7], 4294966144 }
  0x6a   :  { %968 = dma.done.wait [#allocation10], 2048  }
  0x6b   :  { %969 = vsyncadd [#allocation10], 4294965248 }
  0x6c   :  { %970 = dma.done.wait [#allocation13], 1024  }
  0x6d   :  { %971 = vsyncadd [#allocation13], 4294966272  ;;  %v984_v0 = vmov 0.0   ;;  %vm985_vm0 = vmmov 0   ;;  %v752_v1 = vld [vmem:[#allocation9] sm:$0xff]   ;;  %v754_v3 = vld [vmem:[#allocation9 + $0x8] sm:$0xff]  }
  0x6e   :  { %660 = vmatprep.subr.bf16.mxu0 %v984_v0  ;;  %680 = vmatprep.subr.bf16.mxu1 %v984_v0  ;;  %v753_v2 = vld [vmem:[#allocation8] sm:$0xff]   ;;  %v755_v4 = vld [vmem:[#allocation8 + $0x8] sm:$0xff]   ;;  %v756_v5 = vld [vmem:[#allocation9 + $0x10] sm:$0xff]  }
  0x6f   :  { %676 = vmatprep.mubr.msk.bf16.mxu0 %vm985_vm0, %v984_v0  ;;  %696 = vmatprep.mubr.msk.bf16.mxu1 %vm985_vm0, %v984_v0  ;;  %v757_v6 = vld [vmem:[#allocation8 + $0x10] sm:$0xff]   ;;  %v758_v7 = vld [vmem:[#allocation9 + $0x18] sm:$0xff]   ;;  %v760_v9 = vld [vmem:[#allocation9 + $0x20] sm:$0xff]  }
  0x70   :  { %661 = vmatpush3.bf16.msra.mxu0 %v752_v1  ;;  %681 = vmatpush3.bf16.msra.mxu1 %v753_v2  ;;  %v759_v8 = vld [vmem:[#allocation8 + $0x18] sm:$0xff]   ;;  %v761_v10 = vld [vmem:[#allocation8 + $0x20] sm:$0xff]   ;;  %v762_v11 = vld [vmem:[#allocation9 + $0x28] sm:$0xff]  }
  0x71   :  { %662 = vmatprep.subr.bf16.mxu0 %v984_v0  ;;  %682 = vmatprep.subr.bf16.mxu1 %v984_v0  ;;  %v763_v12 = vld [vmem:[#allocation8 + $0x28] sm:$0xff]   ;;  %v764_v13 = vld [vmem:[#allocation9 + $0x30] sm:$0xff]   ;;  %v766_v15 = vld [vmem:[#allocation9 + $0x38] sm:$0xff]  }
  0x72   :  { %v765_v14 = vld [vmem:[#allocation8 + $0x30] sm:$0xff]   ;;  %v767_v16 = vld [vmem:[#allocation8 + $0x38] sm:$0xff]   ;;  %v768_v21 = vld [vmem:[#allocation12] sm:$0xff]  }
  0x73   :  { %v145_v17 = vld [vmem:[#allocation6] sm:$0xff]  ;;  %v147_v18 = vld [vmem:[#allocation3] sm:$0xff]  ;;  %v769_v22 = vld [vmem:[#allocation11] sm:$0xff]  }
  0x74   :  { %663 = vmatpush3.bf16.msra.mxu0 %v754_v3  ;;  %683 = vmatpush3.bf16.msra.mxu1 %v755_v4  ;;  %v149_v19 = vpack.c.bf16 %v145_v17, %v145_v17  ;;  %v148_v20 = vpack.c.bf16 %v147_v18, %v147_v18  ;;  %v770_v23 = vld [vmem:[#allocation12 + $0x8] sm:$0xff]   ;;  %v772_v25 = vld [vmem:[#allocation12 + $0x10] sm:$0xff]   ;;  %v774_v27 = vld [vmem:[#allocation12 + $0x18] sm:$0xff]  }
  0x75   :  { %664 = vmatprep.subr.bf16.mxu0 %v984_v0  ;;  %684 = vmatprep.subr.bf16.mxu1 %v984_v0  ;;  %v771_v24 = vld [vmem:[#allocation11 + $0x8] sm:$0xff]   ;;  %v773_v26 = vld [vmem:[#allocation11 + $0x10] sm:$0xff]   ;;  %v775_v28 = vld [vmem:[#allocation11 + $0x18] sm:$0xff]  }
  0x76   :  { %v776_v29 = vld [vmem:[#allocation12 + $0x20] sm:$0xff]   ;;  %v778_v31 = vld [vmem:[#allocation12 + $0x28] sm:$0xff]   ;;  %v780_v33 = vld [vmem:[#allocation12 + $0x30] sm:$0xff]  }
  0x77   :  { %v777_v30 = vld [vmem:[#allocation11 + $0x20] sm:$0xff]   ;;  %v779_v32 = vld [vmem:[#allocation11 + $0x28] sm:$0xff]   ;;  %v781_v34 = vld [vmem:[#allocation11 + $0x30] sm:$0xff]  }
  0x78   :  { %665 = vmatpush3.bf16.msra.mxu0 %v756_v5  ;;  %685 = vmatpush3.bf16.msra.mxu1 %v757_v6  ;;  %v782_v35 = vld [vmem:[#allocation12 + $0x38] sm:$0xff]   ;;  %v144_v38 = vld [vmem:[%s1196_s4] sm:$0xff]  ;;  %s986_s4 = smov [#allocation15]  }
  0x79   :  { %666 = vmatprep.subr.bf16.mxu0 %v984_v0  ;;  %686 = vmatprep.subr.bf16.mxu1 %v984_v0  ;;  %v783_v36 = vld [vmem:[#allocation11 + $0x38] sm:$0xff]   ;;  %v623_v51 = vld [vmem:[%s1199_s7] ss:$0 sm:$0xff]  ;;  %s575_s16 = sshll.u32 %s986_s4, 4  ;;  %s576_s16 = int_to_ptr.vmem [resolvable:$true] %s575_s16 }
  0x7a   :  { %s920_s17 = scalar_lea.vmem %s576_s16, 128  ;;  %p925_p7 = scmp.lt.s32.totalorder %s576_s16, %s576_s16 }
  0x7b   :  { %p921_p6 = scmp.ne.s32.totalorder %s576_s16, %s920_s17  ;;  %p926_p8 = scmp.lt.s32.totalorder %s920_s17, %s920_s17 }
  0x7c   :  { %667 = vmatpush3.bf16.msra.mxu0 %v758_v7  ;;  %687 = vmatpush3.bf16.msra.mxu1 %v759_v8 }
  0x7d   :  { %668 = vmatprep.subr.bf16.mxu0 %v984_v0  ;;  %688 = vmatprep.subr.bf16.mxu1 %v984_v0  ;;  %p927_p9 = por %p926_p8, %p925_p7 }
  0x7f   :  { %p928_p10 = pnand %p927_p9, %p921_p6 }
  0x80   :  { %669 = vmatpush3.bf16.msra.mxu0 %v760_v9  ;;  %689 = vmatpush3.bf16.msra.mxu1 %v761_v10 }
  0x81   :  { %670 = vmatprep.subr.bf16.mxu0 %v984_v0  ;;  %690 = vmatprep.subr.bf16.mxu1 %v984_v0 }
  0x84   :  { %671 = vmatpush3.bf16.msra.mxu0 %v762_v11  ;;  %691 = vmatpush3.bf16.msra.mxu1 %v763_v12 }
  0x85   :  { %672 = vmatprep.subr.bf16.mxu0 %v984_v0  ;;  %692 = vmatprep.subr.bf16.mxu1 %v984_v0 }
  0x88   :  { %673 = vmatpush3.bf16.msra.mxu0 %v764_v13  ;;  %693 = vmatpush3.bf16.msra.mxu1 %v765_v14 }
  0x89   :  { %674 = vmatprep.subr.bf16.mxu0 %v984_v0  ;;  %694 = vmatprep.subr.bf16.mxu1 %v984_v0 }
  0x8c   :  { %675 = vmatpush3.bf16.msra.mxu0 %v766_v15  ;;  %695 = vmatpush3.bf16.msra.mxu1 %v767_v16 }
  0x8d   :  { %700 = vmatprep.subr.bf16.mxu0 %v984_v0  ;;  %720 = vmatprep.subr.bf16.mxu1 %v984_v0 }
  0x8f   :  { %677 = vmatmul.mubr.bf16.vlgmr.msra.gmra.mrb[0].mxu0 %v149_v19  ;;  %697 = vmatmul.mubr.bf16.vlgmr.msra.gmra.mrb[0].mxu1 %v148_v20 }
  0x90   :  { %701 = vmatpush3.bf16.msra.mxu0 %v768_v21  ;;  %721 = vmatpush3.bf16.msra.mxu1 %v769_v22 }
  0x91   :  { %702 = vmatprep.subr.bf16.mxu0 %v984_v0  ;;  %722 = vmatprep.subr.bf16.mxu1 %v984_v0 }
  0x92   :  { %716 = vmatprep.mubr.msk.bf16.mxu0 %vm985_vm0, %v984_v0  ;;  %736 = vmatprep.mubr.msk.bf16.mxu1 %vm985_vm0, %v984_v0 }
  0x94   :  { %703 = vmatpush3.bf16.msra.mxu0 %v770_v23  ;;  %723 = vmatpush3.bf16.msra.mxu1 %v771_v24 }
  0x95   :  { %704 = vmatprep.subr.bf16.mxu0 %v984_v0  ;;  %724 = vmatprep.subr.bf16.mxu1 %v984_v0 }
  0x98   :  { %705 = vmatpush3.bf16.msra.mxu0 %v772_v25  ;;  %725 = vmatpush3.bf16.msra.mxu1 %v773_v26 }
  0x99   :  { %706 = vmatprep.subr.bf16.mxu0 %v984_v0  ;;  %726 = vmatprep.subr.bf16.mxu1 %v984_v0 }
  0x9c   :  { %707 = vmatpush3.bf16.msra.mxu0 %v774_v27  ;;  %727 = vmatpush3.bf16.msra.mxu1 %v775_v28 }
  0x9d   :  { %708 = vmatprep.subr.bf16.mxu0 %v984_v0  ;;  %728 = vmatprep.subr.bf16.mxu1 %v984_v0 }
  0xa0   :  { %709 = vmatpush3.bf16.msra.mxu0 %v776_v29  ;;  %729 = vmatpush3.bf16.msra.mxu1 %v777_v30 }
  0xa1   :  { %710 = vmatprep.subr.bf16.mxu0 %v984_v0  ;;  %730 = vmatprep.subr.bf16.mxu1 %v984_v0 }
  0xa4   :  { %711 = vmatpush3.bf16.msra.mxu0 %v778_v31  ;;  %731 = vmatpush3.bf16.msra.mxu1 %v779_v32 }
  0xa5   :  { %712 = vmatprep.subr.bf16.mxu0 %v984_v0  ;;  %732 = vmatprep.subr.bf16.mxu1 %v984_v0 }
  0xa8   :  { %713 = vmatpush3.bf16.msra.mxu0 %v780_v33  ;;  %733 = vmatpush3.bf16.msra.mxu1 %v781_v34 }
  0xa9   :  { %714 = vmatprep.subr.bf16.mxu0 %v984_v0  ;;  %734 = vmatprep.subr.bf16.mxu1 %v984_v0 }
  0xac   :  { %715 = vmatpush3.bf16.msra.mxu0 %v782_v35  ;;  %735 = vmatpush3.bf16.msra.mxu1 %v783_v36 }
  0xaf   :  { %717 = vmatmul.mubr.bf16.vlgmr.msra.gmra.mrb[4].mxu0 %v149_v19  ;;  %737 = vmatmul.mubr.bf16.vlgmr.msra.gmra.mrb[4].mxu1 %v148_v20 }
 0x162   :  { %v232_v37 = vpop.f32.mrb[0].mxu0  ;;  %v320_v39 = vpop.f32.mrb[0].mxu1 }
 0x163   :  { %v678_v40 = vpop.f32.mrb[1].mxu0  ;;  %v321_v41 = vadd.f32 %v320_v39, %v232_v37  ;;  %v698_v42 = vpop.f32.mrb[1].mxu1 }
 0x164   :  { %v235_v43 = vpop.f32.mrb[2].mxu0  ;;  %v323_v44 = vpop.f32.mrb[2].mxu1 }
 0x165   :  { %v679_v45 = vpop.f32.mrb[3].mxu0  ;;  %v326_v46 = vadd.f32 %v321_v41, %v144_v38  ;;  %v699_v47 = vpop.f32.mrb[3].mxu1 }
 0x167   :  { %327 = vst [vmem:[#allocation15] sm:$0xff] %v326_v46 }
 0x182   :  { %v446_v48 = vpop.f32.mrb[4].mxu0  ;;  %v534_v49 = vpop.f32.mrb[4].mxu1 }
 0x183   :  { %v718_v50 = vpop.f32.mrb[5].mxu0  ;;  %v535_v52 = vadd.f32 %v534_v49, %v446_v48  ;;  %v738_v53 = vpop.f32.mrb[5].mxu1 }
 0x184   :  { %v449_v54 = vpop.f32.mrb[6].mxu0  ;;  %v537_v55 = vpop.f32.mrb[6].mxu1 }
 0x185   :  { %v719_v56 = vpop.f32.mrb[7].mxu0  ;;  %v739_v57 = vpop.f32.mrb[7].mxu1  ;;  %v547_v58 = vadd.f32 %v623_v51, %v535_v52 }
 0x187   :  { %548 = vmax.xlane.f32.xlu0 %v547_v58 }
 0x214   :  { %v549_v59 = vpop.xlane.xlu0 %548 }
 0x215   :  { %v550_v60 = vsub.f32 %v547_v58, %v549_v59 }
 0x217   :  { %v551_v61 = vmul.f32 1.442695, %v550_v60 }
 0x219   :  { %784 = vpow2.f32 %v551_v61 }
 0x223   :  { %v785_v62 = vpop.eup %784 }
 0x224   :  { %553 = vadd.xlane.f32.xlu0 %v785_v62 }
 0x225   :  { %931 = shalt.err (!%p928_p10)
}
 0x226   :  { %s932_s19 = scalar_lea.hbm %s1201_s9, 128 }
 0x227   :  { %p933_p11 = scmp.ne.s32.totalorder %s1201_s9, %s932_s19  ;;  %p936_p12 = scmp.lt.u32.totalorder %s932_s19, %s1201_s9 }
 0x229   :  { %p938_p13 = pnand %p936_p12, %p933_p11 }
 0x22b   :  { %941 = shalt.err (!%p938_p13)
}
 0x22c   :  { %578 = dma.vmem_to_hbm [thread:$0]  %s576_s16, 128, %s1201_s9, [#allocation16]  }
 0x22d   :  { %s987_s25 = smov [#allocation14]  }
 0x22e   :  { %s565_s26 = sshll.u32 %s987_s25, 4  ;;  %s566_s26 = int_to_ptr.vmem [resolvable:$true] %s565_s26 }
 0x22f   :  { %s942_s27 = scalar_lea.vmem %s566_s26, 128  ;;  %p947_p1 = scmp.lt.s32.totalorder %s566_s26, %s566_s26 }
 0x230   :  { %p943_p0 = scmp.ne.s32.totalorder %s566_s26, %s942_s27  ;;  %p948_p2 = scmp.lt.s32.totalorder %s942_s27, %s942_s27 }
 0x232   :  { %p949_p3 = por %p948_p2, %p947_p1 }
 0x234   :  { %p950_p4 = pnand %p949_p3, %p943_p0 }
 0x2b1   :  { %v554_v63 = vpop.xlane.xlu0 %553 }
 0x2b2   :  { %786 = vlog2.f32 %v554_v63 }
 0x2bc   :  { %v787_v0 = vpop.eup %786 }
 0x2bd   :  { %v556_v1 = vmul.f32 0.6931472, %v787_v0 }
 0x2bf   :  { %v557_v2 = vsub.f32 %v550_v60, %v556_v1 }
 0x2c1   :  { %558 = vst [vmem:[#allocation14] sm:$0xff] %v557_v2 }
 0x2c2   :  { %953 = shalt.err (!%p950_p4)
}
 0x2c3   :  { %s954_s9 = scalar_lea.hbm %s1200_s8, 128 }
 0x2c4   :  { %p955_p5 = scmp.ne.s32.totalorder %s1200_s8, %s954_s9  ;;  %p958_p6 = scmp.lt.u32.totalorder %s954_s9, %s1200_s8 }
 0x2c6   :  { %p960_p7 = pnand %p958_p6, %p955_p5 }
 0x2c8   :  { %963 = shalt.err (!%p960_p7)
}
 0x2c9   :  { %568 = dma.vmem_to_hbm [thread:$0]  %s566_s26, 128, %s1200_s8, [#allocation5]  }
 0x2ca   :  { %972 = dma.done.wait [#allocation5], 128  }
 0x2cb   :  { %973 = vsyncadd [#allocation5], 4294967168 }
 0x2cc   :  { %974 = dma.done.wait [#allocation16], 128  }
 0x2cd   :  { %975 = vsyncadd [#allocation16], 4294967168 }
 0x2ce   :  { %585 = vsyncpa [#allocation4], 1 }
 0x2cf   :  { %586 = vsyncpa [#allocation7], 1 }
 0x2d0   :  { %587 = vsyncpa [#allocation10], 1 }
 0x2d1   :  { %588 = vsyncpa [#allocation13], 1 }
 0x2d2   :  { %589 = vsyncpa [#allocation5], 1 }
 0x2d3   :  { %590 = vsyncpa [#allocation16], 1 }

</bundles_post_ra>
